<compile_context>
chip_gen: v5e
topology: v5e:2x2
jax: 0.10.0
libtpu: 0.0.40
codegen_flags: <defaults>
</compile_context>

<pallas_src>
import functools

import jax
import jax.numpy as jnp
from jax.experimental import pallas as pl
from jax.experimental.pallas import tpu as pltpu

PI = 3.141592653589793


def _rotate_kernel_aligned(ht_ref, r_ref, out_ref, *, dim_r, phase_scale_signed):
    # dim_r % 128 == 0: slices and stores are lane-aligned (unmasked vst).
    re_ht = ht_ref[:, :dim_r].astype(jnp.float32)
    im_ht = ht_ref[:, dim_r:].astype(jnp.float32)
    phase = r_ref[...].astype(jnp.float32) * phase_scale_signed
    c = jnp.cos(phase)          # EUP
    s = jnp.sin(phase)          # EUP; mode sign already folded into the angle
    out_ref[:, :dim_r] = (re_ht * c - im_ht * s).astype(out_ref.dtype)
    out_ref[:, dim_r:] = (im_ht * c + re_ht * s).astype(out_ref.dtype)


def _rotate_kernel_packed(ht_ref, r_ref, out_ref, *, dim_r, phase_scale_signed):
    # Generic path (dim_r % 128 != 0): avoid sub-128-lane slices and masked
    # partial stores.  With ht = [re | im] and swapped = roll(ht, dim_r) =
    # [im | re], the complex rotation is
    #   out = ht * [cos | cos] + swapped * [-sin | sin]
    # and the output is one full-width lane-dense store.
    ht = ht_ref[...].astype(jnp.float32)                # (tm, 2*dim_r) = [re | im]
    swapped = pltpu.roll(ht, shift=dim_r, axis=1)       # [im | re]  (XLU slot)
    phase = r_ref[...].astype(jnp.float32) * phase_scale_signed
    c = jnp.cos(phase)
    s = jnp.sin(phase)
    rel_cc = jnp.concatenate([c, c], axis=-1)
    rel_ss = jnp.concatenate([-s, s], axis=-1)
    out_ref[...] = (ht * rel_cc + swapped * rel_ss).astype(out_ref.dtype)


def _choose_block_rows(B, dim_r, itemsize, *, target_block_bytes=3 << 20,
                       vmem_budget_bytes=32 << 20, min_grid_steps=4):
    """Row-tile heuristic: big blocks (mem-bound), bounded VMEM, >=4 grid steps."""
    row_mult = max(8, 32 // itemsize)          # 8 for f32, 16 for bf16
    if B <= row_mult:
        return B                               # block == full dim; always legal
    # ~3 MiB per ht block (ht is the widest input: 2*dim_r lanes)
    tm = target_block_bytes // (2 * dim_r * itemsize)
    # double-buffered working set: 2 * (ht + r + out) = 10*dim_r*itemsize per row
    tm = min(tm, vmem_budget_bytes // (10 * dim_r * itemsize))
    # keep enough grid steps that the "parallel" axis spans both TCs on v7x
    tm = min(tm, pl.cdiv(B, min_grid_steps))
    tm = min(tm, B)
    tm = max(row_mult, (tm // row_mult) * row_mult)
    return tm


def scoring_forward(ht, r, mode, *, dim_r, margin, eps, block_rows=None):
    """Pallas implementation of ScoringModule.forward(ht, r, mode)."""
    # Mirror the (B, 1, K) -> squeeze(1) path of the PyTorch module.
    if ht.ndim == 3 and ht.shape[1] == 1:
        ht = ht.reshape(ht.shape[0], ht.shape[-1])
        r = r.reshape(r.shape[0], r.shape[-1])
    B, two_d = ht.shape
    assert two_d == 2 * dim_r, (two_d, dim_r)
    assert r.shape == (B, dim_r), (r.shape, (B, dim_r))

    rel_embedding_range = (margin + eps) / dim_r       # module buffer
    phase_scale = PI / rel_embedding_range             # folded constant
    sign = 1.0 if mode == "tail" else -1.0             # head == tail with -phase
    phase_scale_signed = sign * phase_scale            # cos even / sin odd

    itemsize = int(jnp.dtype(ht.dtype).itemsize)
    tm = block_rows if block_rows is not None else _choose_block_rows(B, dim_r, itemsize)
    tm = min(tm, B)
    grid = (pl.cdiv(B, tm),)

    if dim_r % 128 == 0:
        kernel = functools.partial(_rotate_kernel_aligned, dim_r=dim_r,
                                   phase_scale_signed=phase_scale_signed)
    else:
        kernel = functools.partial(_rotate_kernel_packed, dim_r=dim_r,
                                   phase_scale_signed=phase_scale_signed)

    cost = pl.CostEstimate(
        flops=7 * B * dim_r,
        transcendentals=2 * B * dim_r,
        bytes_accessed=5 * B * dim_r * itemsize,
    )

    return pl.pallas_call(
        kernel,
        out_shape=jax.ShapeDtypeStruct((B, 2 * dim_r), ht.dtype),
        grid=grid,
        in_specs=[
            pl.BlockSpec((tm, 2 * dim_r), lambda i: (i, 0)),
            pl.BlockSpec((tm, dim_r), lambda i: (i, 0)),
        ],
        out_specs=pl.BlockSpec((tm, 2 * dim_r), lambda i: (i, 0)),
        compiler_params=pltpu.CompilerParams(
            dimension_semantics=("parallel",),
            vmem_limit_bytes=48 << 20,     # raise scoped VMEM (v5e default 16 MiB)
        ),
        cost_estimate=cost,
    )(ht, r)


def _reference(ht, r, mode, *, dim_r, margin, eps):
    # Pure-JAX mirror of the PyTorch forward, for correctness checking.
    if ht.ndim == 3 and ht.shape[1] == 1:
        ht = ht.reshape(ht.shape[0], ht.shape[-1])
        r = r.reshape(r.shape[0], r.shape[-1])
    rel_embedding_range = (margin + eps) / dim_r
    re_ht, im_ht = jnp.split(ht, 2, axis=-1)
    phase = r / (rel_embedding_range / PI)
    re_rel = jnp.cos(phase)
    im_rel = jnp.sin(phase)
    if mode == "tail":
        re_cond = re_ht * re_rel - im_ht * im_rel
        im_cond = re_ht * im_rel + im_ht * re_rel
    else:
        re_cond = re_rel * re_ht + im_rel * im_ht
        im_cond = re_rel * im_ht - im_rel * re_ht
    return jnp.concatenate([re_cond, im_cond], axis=-1)


if __name__ == "__main__":
    key = jax.random.PRNGKey(0)
    k1, k2, k3, k4 = jax.random.split(key, 4)
    margin, eps = 6.0, 2.0

    # Case 1: dim_r = 64 (2*dim_r = 128) -> packed / roll path.
    B1, d1 = 8, 64
    ht1 = jax.random.normal(k1, (B1, 1, 2 * d1), dtype=jnp.float32)
    r1 = jax.random.uniform(k2, (B1, 1, d1), dtype=jnp.float32,
                            minval=-0.125, maxval=0.125)

    # Case 2: dim_r = 128 -> lane-aligned path (also exercises grid > 1).
    B2, d2 = 16, 128
    ht2 = jax.random.normal(k3, (B2, 1, 2 * d2), dtype=jnp.float32)
    r2 = jax.random.uniform(k4, (B2, 1, d2), dtype=jnp.float32,
                            minval=-0.0625, maxval=0.0625)

    for ht, r, dim_r in ((ht1, r1, d1), (ht2, r2, d2)):
        for mode in ("tail", "head"):
            out = scoring_forward(ht, r, mode, dim_r=dim_r, margin=margin, eps=eps)
            jax.block_until_ready(out)
            ref = _reference(ht, r, mode, dim_r=dim_r, margin=margin, eps=eps)
            assert out.shape == ref.shape, (out.shape, ref.shape)
            assert jnp.allclose(out, ref, atol=1e-5, rtol=1e-5), (
                mode, dim_r, float(jnp.max(jnp.abs(out - ref))))

    print("KERNEL_OK")
</pallas_src>

<mosaic_0001>
module attributes {stable_mosaic.version = 11 : i64} {
  func.func @_rotate_kernel_packed(%arg0: i32, %arg1: memref<8x128xf32, #tpu.memory_space<vmem>>, %arg2: memref<8x64xf32, #tpu.memory_space<vmem>>, %arg3: memref<8x128xf32, #tpu.memory_space<vmem>>) attributes {dimension_semantics = [#tpu.dimension_semantics<parallel>], iteration_bounds = array<i64: 1>, scalar_prefetch = 0 : i64, scratch_operands = 0 : i64, tpu.core_type = #tpu.core_type<tc>, window_params = [{transform_indices = @transform_0, window_bounds = array<i64: 8, 128>}, {transform_indices = @transform_1, window_bounds = array<i64: 8, 64>}, {transform_indices = @transform_2, window_bounds = array<i64: 8, 128>}]} {
    %c0 = arith.constant 0 : index
    %c0_0 = arith.constant 0 : index
    %0 = vector.load %arg1[%c0, %c0_0] : memref<8x128xf32, #tpu.memory_space<vmem>>, vector<8x128xf32>
    %c64_i32 = arith.constant 64 : i32
    %1 = tpu.dynamic_rotate %0 by %c64_i32 dim 1 : vector<8x128xf32>, i32 -> vector<8x128xf32>
    %c0_1 = arith.constant 0 : index
    %c0_2 = arith.constant 0 : index
    %2 = vector.load %arg2[%c0_1, %c0_2] : memref<8x64xf32, #tpu.memory_space<vmem>>, vector<8x64xf32>
    %cst = arith.constant 25.1327419 : f32
    %3 = vector.broadcast %cst : f32 to vector<8x64xf32>
    %4 = arith.mulf %2, %3 : vector<8x64xf32>
    %5 = math.cos %4 : vector<8x64xf32>
    %6 = math.sin %4 : vector<8x64xf32>
    %7 = tpu.concatenate %5, %5 in 1 : vector<8x64xf32>, vector<8x64xf32> -> vector<8x128xf32>
    %cst_3 = arith.constant 0.000000e+00 : f32
    %8 = vector.broadcast %cst_3 : f32 to vector<8x64xf32>
    %9 = arith.subf %8, %6 : vector<8x64xf32>
    %10 = tpu.concatenate %9, %6 in 1 : vector<8x64xf32>, vector<8x64xf32> -> vector<8x128xf32>
    %11 = arith.mulf %0, %7 : vector<8x128xf32>
    %12 = arith.mulf %1, %10 : vector<8x128xf32>
    %13 = arith.addf %11, %12 : vector<8x128xf32>
    %c0_4 = arith.constant 0 : index
    %c0_5 = arith.constant 0 : index
    %14 = vector.load %arg3[%c0_4, %c0_5] : memref<8x128xf32, #tpu.memory_space<vmem>>, vector<8x128xf32>
    tpu.vector_store %arg3[%c0_4, %c0_5], %13 {strides = array<i32>} : memref<8x128xf32, #tpu.memory_space<vmem>>, vector<8x128xf32>,
    return
  }
  func.func @transform_0(%arg0: i32) -> (i32, i32) {
    %c0_i32 = arith.constant 0 : i32
    %c0_i32_0 = arith.constant 0 : i32
    return %arg0, %c0_i32 : i32, i32
  }
  func.func @transform_1(%arg0: i32) -> (i32, i32) {
    %c0_i32 = arith.constant 0 : i32
    %c0_i32_0 = arith.constant 0 : i32
    return %arg0, %c0_i32 : i32, i32
  }
  func.func @transform_2(%arg0: i32) -> (i32, i32) {
    %c0_i32 = arith.constant 0 : i32
    %c0_i32_0 = arith.constant 0 : i32
    return %arg0, %c0_i32 : i32, i32
  }
}

</mosaic_0001>

<bundles_post_ra>
// kernel: tpu_custom_call.1
= control target key start
LH: loop header
LB: loop body
LE: loop exit
PB: predicated region body
PF: predicated region fallthrough
CT: control target
= control target key end

     0   :  { %7 = vsyncpa [#allocation3], 0  ;;  %s567_s0 = inlined_call_operand.hbm [shape: f32[8,128], index: 0, kind: input, shape index: {}]   ;;  %s568_s1 = inlined_call_operand.hbm [shape: f32[8,64], index: 1, kind: input, shape index: {}]   ;;  %s569_s2 = inlined_call_operand.hbm [shape: f32[8,128], index: 2, kind: output, shape index: {}]  }
   0x1   :  { %8 = vsyncpa [#allocation6], 0 }
   0x2   :  { %9 = vsyncpa [#allocation4], 0  ;;  %s15_s11 = sshll.u32 %s567_s0, 4  ;;  %s483_s12 = smov [#allocation2]   ;;  %s16_s11 = int_to_ptr.hbm [resolvable:$true] %s15_s11 }
   0x3   :  { %s17_s13 = sshll.u32 %s483_s12, 4  ;;  %s26_s16 = sshll.u32 %s568_s1, 4  ;;  %s18_s13 = int_to_ptr.vmem [resolvable:$true] %s17_s13  ;;  %s27_s16 = int_to_ptr.hbm [resolvable:$true] %s26_s16 }
   0x4   :  { %20 = dma.hbm_to_vmem [thread:$0]  %s16_s11, 128, %s18_s13, [#allocation3]  }
   0x5   :  { %s484_s17 = smov [#allocation5]  }
   0x6   :  { %s28_s18 = sshll.u32 %s484_s17, 4  ;;  %s29_s18 = int_to_ptr.vmem [resolvable:$true] %s28_s18 }
   0x7   :  { %31 = dma.hbm_to_vmem [thread:$0]  %s27_s16, 128, %s29_s18, [#allocation6]  }
   0x8   :  { %477 = dma.done.wait [#allocation3], 128  }
   0x9   :  { %478 = vsyncadd [#allocation3], 4294967168 }
   0xa   :  { %479 = dma.done.wait [#allocation6], 128  }
   0xb   :  { %480 = vsyncadd [#allocation6], 4294967168  ;;  %v43_v0 = vld [vmem:[#allocation5] sm:$0xff]  ;;  %v485_v13 = vmov 683565275   ;;  %s492_s0 = smov 64  }
   0xc   :  { %v515_v1 = vmul.f32 25.132742, %v43_v0  ;;  %v486_v15 = vmov 2475754826   ;;  %v487_v17 = vmov 2131351028  }
   0xd   :  { %v488_v19 = vmov 2102212464   ;;  %v489_v21 = vmov 920167782   ;;  %v490_v27 = vmov 1326507024  }
   0xe   :  { %v48_v2 = vand.u32 2139095040, %v515_v1  ;;  %v45_v4 = vand.u32 2147483647, %v515_v1  ;;  %vm47_vm12 = vcmp.lt.s32.totalorder %v515_v1, 0  ;;  %s493_s1 = smov [#allocation7]   ;;  %s377_s22 = sshll.u32 %s569_s2, 4  ;;  %s378_s22 = int_to_ptr.hbm [resolvable:$true] %s377_s22 }
   0xf   :  { %s375_s19 = sshll.u32 %s493_s1, 4  ;;  %s376_s19 = int_to_ptr.vmem [resolvable:$true] %s375_s19 }
  0x10   :  { %v49_v3 = vshrl.u32 %v48_v2, 23  ;;  %v52_v7 = vand.u32 8388607, %v45_v4  ;;  %v491_v2 = vmov 0   ;;  %vm46_vm13 = vcmp.le.f32.partialorder %v45_v4, 0.7853982 }
  0x12   :  { %v388_v5 = vadd.s32 4294967169, %v49_v3  ;;  %v53_v10 = vor.u32 8388608, %v52_v7 }
  0x14   :  { %v55_v6 = vadd.s32 1, %v388_v5  ;;  %v524_v29 = vshll.u32 %v53_v10, 8 }
  0x16   :  { %vm56_vm0 = vcmp.gt.s32.totalorder %v55_v6, 0  ;;  %v94_v41 = vand.u32 65535, %v524_v29  ;;  %v95_v42 = vshrl.u32 %v524_v29, 16 }
  0x17   :  { %v57_v8 = vsel %vm56_vm0, %v55_v6, 0 }
  0x18   :  { %v59_v9 = vand.u32 31, %v57_v8  ;;  %v521_v11 = vshrl.u32 %v57_v8, 5 }
  0x1a   :  { %v60_v12 = vsub.s32 32, %v59_v9  ;;  %v62_v14 = vshll.u32 %v485_v13, %v59_v9  ;;  %v65_v16 = vshll.u32 %v486_v15, %v59_v9  ;;  %v68_v18 = vshll.u32 %v487_v17, %v59_v9 }
  0x1b   :  { %v71_v20 = vshll.u32 %v488_v19, %v59_v9  ;;  %v74_v22 = vshll.u32 %v489_v21, %v59_v9  ;;  %vm77_vm1 = vcmp.lt.s32.totalorder %v521_v11, 1  ;;  %vm80_vm2 = vcmp.lt.s32.totalorder %v521_v11, 4 }
  0x1c   :  { %v63_v23 = vshrl.u32 %v486_v15, %v60_v12  ;;  %v66_v24 = vshrl.u32 %v487_v17, %v60_v12  ;;  %v69_v25 = vshrl.u32 %v488_v19, %v60_v12  ;;  %v72_v26 = vshrl.u32 %v489_v21, %v60_v12 }
  0x1d   :  { %v75_v28 = vshrl.u32 %v490_v27, %v60_v12  ;;  %vm79_vm3 = vcmp.lt.s32.totalorder %v521_v11, 3  ;;  %vm78_vm4 = vcmp.lt.s32.totalorder %v521_v11, 2  ;;  %v61_v49 = vshrl.u32 %v485_v13, %v60_v12 }
  0x1e   :  { %v64_v30 = vor.u32 %v63_v23, %v62_v14  ;;  %v67_v31 = vor.u32 %v66_v24, %v65_v16  ;;  %v70_v32 = vor.u32 %v69_v25, %v68_v18  ;;  %v73_v33 = vor.u32 %v72_v26, %v71_v20 }
  0x1f   :  { %v76_v34 = vor.u32 %v75_v28, %v74_v22 }
  0x20   :  { %v85_v35 = vsel %vm77_vm1, %v64_v30, %v67_v31  ;;  %v89_v36 = vsel %vm77_vm1, %v67_v31, %v70_v32  ;;  %v86_v37 = vsel %vm80_vm2, %v73_v33, 920167782  ;;  %v81_v62 = vsel %vm77_vm1, %v61_v49, %v64_v30 }
  0x21   :  { %v90_v38 = vsel %vm80_vm2, %v76_v34, 1326507024  ;;  %v87_v39 = vsel %vm79_vm3, %v70_v32, %v86_v37  ;;  %v82_v0 = vsel %vm80_vm2, %v70_v32, 2102212464  ;;  %vm188_vm1 = vweird.f32 %v515_v1 }
  0x22   :  { %v91_v40 = vsel %vm79_vm3, %v73_v33, %v90_v38  ;;  %v88_v43 = vsel %vm78_vm4, %v85_v35, %v87_v39  ;;  %v83_v13 = vsel %vm79_vm3, %v67_v31, %v82_v0 }
  0x23   :  { %v92_v44 = vsel %vm78_vm4, %v89_v36, %v91_v40  ;;  %v118_v47 = vand.u32 65535, %v88_v43  ;;  %v119_v48 = vshrl.u32 %v88_v43, 16  ;;  %v84_v21 = vsel %vm78_vm4, %v81_v62, %v83_v13 }
  0x24   :  { %v96_v45 = vand.u32 65535, %v92_v44  ;;  %v97_v46 = vshrl.u32 %v92_v44, 16  ;;  %v138_v25 = vmul.u32 %v524_v29, %v84_v21 }
  0x25   :  { %v120_v53 = vmul.u32 %v118_v47, %v94_v41  ;;  %v121_v54 = vmul.u32 %v119_v48, %v94_v41  ;;  %v122_v55 = vmul.u32 %v118_v47, %v95_v42  ;;  %v123_v59 = vmul.u32 %v119_v48, %v95_v42 }
  0x26   :  { %v98_v50 = vmul.u32 %v96_v45, %v94_v41  ;;  %v99_v51 = vmul.u32 %v97_v46, %v94_v41  ;;  %v100_v52 = vmul.u32 %v96_v45, %v95_v42  ;;  %v101_v56 = vmul.u32 %v97_v46, %v95_v42 }
  0x27   :  { %v124_v60 = vshll.u32 %v121_v54, 16  ;;  %v126_v61 = vshll.u32 %v122_v55, 16  ;;  %v125_v10 = vshrl.u32 %v121_v54, 16  ;;  %v127_v17 = vshrl.u32 %v122_v55, 16 }
  0x28   :  { %v102_v57 = vshll.u32 %v99_v51, 16  ;;  %v104_v58 = vshll.u32 %v100_v52, 16  ;;  %v103_v6 = vshrl.u32 %v99_v51, 16  ;;  %v105_v14 = vshrl.u32 %v100_v52, 16 }
  0x29   :  { %vm128_vm6 = vc.u32 %v120_v53, %v124_v60  ;;  %v130_v5 = vadd.s32 %v124_v60, %v120_v53 }
  0x2a   :  { %vm106_vm5 = vc.u32 %v98_v50, %v102_v57  ;;  %v108_v63 = vadd.s32 %v102_v57, %v98_v50  ;;  %v129_v8 = vsel %vm128_vm6, 1, %v491_v2  ;;  %v40_v50 = vld [vmem:[#allocation2] sm:$0xff] }
  0x2b   :  { %v107_v3 = vsel %vm106_vm5, 1, %v491_v2  ;;  %v131_v12 = vadd.s32 %v129_v8, %v123_v59  ;;  %vm132_vm8 = vc.u32 %v130_v5, %v126_v61  ;;  %v134_v20 = vadd.s32 %v130_v5, %v126_v61  ;;  %41 = vrot.lane.b32.xlu1 %v40_v50, %s492_s0 }
  0x2c   :  { %v109_v7 = vadd.s32 %v107_v3, %v101_v56  ;;  %vm110_vm7 = vc.u32 %v108_v63, %v104_v58  ;;  %v133_v16 = vsel %vm132_vm8, 1, %v491_v2  ;;  %vm358_vm5 = vcmask 523264  }
  0x2d   :  { %v111_v9 = vsel %vm110_vm7, 1, %v491_v2  ;;  %v135_v18 = vadd.s32 %v133_v16, %v131_v12 }
  0x2e   :  { %v113_v15 = vadd.s32 %v111_v9, %v109_v7 }
  0x2f   :  { %v136_v22 = vadd.s32 %v135_v18, %v125_v10 }
  0x30   :  { %v114_v19 = vadd.s32 %v113_v15, %v103_v6 }
  0x31   :  { %v137_v24 = vadd.s32 %v136_v22, %v127_v17 }
  0x32   :  { %v115_v23 = vadd.s32 %v114_v19, %v105_v14 }
  0x33   :  { %v141_v26 = vadd.s32 1, %v137_v24 }
  0x34   :  { %vm140_vm9 = vc.u32 %v115_v23, %v134_v20  ;;  %v139_v11 = vadd.s32 %v134_v20, %v115_v23 }
  0x35   :  { %v142_v27 = vsel %vm140_vm9, %v141_v26, %v137_v24 }
  0x36   :  { %v143_v28 = vadd.s32 %v142_v27, %v138_v25 }
  0x38   :  { %v144_v30 = vadd.s32 536870912, %v143_v28 }
  0x3a   :  { %v145_v31 = vshrl.u32 %v144_v30, 30 }
  0x3c   :  { %v146_v32 = vshll.u32 %v145_v31, 30  ;;  %v169_v52 = vsub.s32 4, %v145_v31 }
  0x3e   :  { %v147_v33 = vsub.s32 %v143_v28, %v146_v32  ;;  %v170_v57 = vsel %vm47_vm12, %v169_v52, %v145_v31 }
  0x3f   :  { %v172_v60 = vsel %vm46_vm13, 0, %v170_v57 }
  0x40   :  { %vm148_vm10 = vcmp.lt.s32.totalorder %v147_v33, 0  ;;  %v149_v34 = vsub.s32 0, %v147_v33  ;;  %v189_v0 = vand.u32 3, %v172_v60  ;;  %v343_v2 = vadd.s32 3, %v172_v60 }
  0x42   :  { %v150_v35 = vsel %vm148_vm10, %v149_v34, %v147_v33  ;;  %vm194_vm14 = vcmp.eq.s32.totalorder %v189_v0, 2  ;;  %v344_v8 = vand.u32 3, %v343_v2  ;;  %vm191_vm15 = vcmp.eq.s32.totalorder %v189_v0, 0 }
  0x43   :  { %v151_v36 = vclz %v150_v35  ;;  %vm190_vm0 = vcmp.lt.s32.totalorder %v189_v0, 2 }
  0x44   :  { %vm346_vm2 = vcmp.eq.s32.totalorder %v344_v8, 0  ;;  %vm349_vm3 = vcmp.eq.s32.totalorder %v344_v8, 2  ;;  %vm345_vm4 = vcmp.lt.s32.totalorder %v344_v8, 2 }
  0x45   :  { %v389_v37 = vadd.s32 4294967294, %v151_v36 }
  0x47   :  { %vm390_vm11 = vcmp.lt.s32.totalorder %v389_v37, 0 }
  0x48   :  { %v154_v38 = vsel %vm390_vm11, 0, %v389_v37 }
  0x49   :  { %v155_v39 = vsub.s32 32, %v154_v38  ;;  %v156_v40 = vshll.u32 %v147_v33, %v154_v38  ;;  %v159_v41 = vsub.s32 4294967266, %v154_v38 }
  0x4b   :  { %v157_v29 = vshrl.u32 %v139_v11, %v155_v39  ;;  %v160_v42 = vadd.s32 127, %v159_v41 }
  0x4d   :  { %v158_v43 = vor.u32 %v157_v29, %v156_v40  ;;  %v161_v44 = vshll.u32 %v160_v42, 23 }
  0x4f   :  { %v162_v45 = vor.u32 4788187, %v161_v44  ;;  %v165_v46 = vcvt.s32.f32 %v158_v43 }
  0x51   :  { %v163_v47 = vand.u32 2147483647, %v162_v45 }
  0x53   :  { %v166_v48 = vmul.f32 %v165_v46, %v163_v47 }
  0x55   :  { %v167_v49 = vxor.u32 2147483648, %v166_v48 }
  0x57   :  { %v168_v51 = vsel %vm47_vm12, %v167_v49, %v166_v48 }
  0x58   :  { %v171_v53 = vsel %vm46_vm13, %v515_v1, %v168_v51 }
  0x59   :  { %v173_v54 = vmul.f32 %v171_v53, %v171_v53 }
  0x5b   :  { %v174_v55 = vmul.f32 -0.001358992, %v173_v54  ;;  %v181_v56 = vmul.f32 -0.00019511016, %v173_v54 }
  0x5d   :  { %v175_v58 = vadd.f32 0.041655596, %v174_v55  ;;  %v182_v59 = vadd.f32 0.008332121, %v181_v56 }
  0x5f   :  { %v176_v61 = vmul.f32 %v175_v58, %v173_v54  ;;  %v183_v62 = vmul.f32 %v182_v59, %v173_v54 }
  0x61   :  { %v177_v63 = vadd.f32 -0.4999988, %v176_v61  ;;  %v184_v4 = vadd.f32 -0.16666654, %v183_v62 }
  0x63   :  { %v178_v3 = vmul.f32 %v177_v63, %v173_v54  ;;  %v185_v5 = vmul.f32 %v184_v4, %v173_v54 }
  0x65   :  { %v179_v6 = vadd.f32 1.0, %v178_v3  ;;  %v186_v7 = vadd.f32 1.0, %v185_v5 }
  0x67   :  { %v187_v9 = vmul.f32 %v186_v7, %v171_v53  ;;  %v195_v10 = vxor.u32 2147483648, %v179_v6 }
  0x69   :  { %v192_v12 = vxor.u32 2147483648, %v187_v9  ;;  %v196_v13 = vsel %vm194_vm14, %v195_v10, %v187_v9  ;;  %v351_v18 = vsel %vm349_vm3, %v195_v10, %v187_v9 }
  0x6b   :  { %v193_v14 = vsel %vm191_vm15, %v179_v6, %v192_v12  ;;  %v348_v17 = vsel %vm346_vm2, %v179_v6, %v192_v12 }
  0x6c   :  { %v197_v15 = vsel %vm190_vm0, %v193_v14, %v196_v13  ;;  %v352_v19 = vsel %vm345_vm4, %v348_v17, %v351_v18 }
  0x6d   :  { %v198_v16 = vsel %vm188_vm1, nan, %v197_v15  ;;  %v353_v20 = vsel %vm188_vm1, nan, %v352_v19 }
  0x6e   :  { %355 = vrot.lane.b32.xlu0 %v198_v16, %s492_s0  ;;  %v360_v22 = vsub.f32 0.0, %v353_v20 }
  0x76   :  { %362 = vrot.lane.b32.xlu0 %v353_v20, %s492_s0 }
  0x9d   :  { %v42_v24 = vpop.permute.xlu1 %41 }
  0xe0   :  { %v356_v21 = vpop.permute.xlu0 %355 }
  0xe1   :  { %v359_v23 = vsel %vm358_vm5, %v198_v16, %v356_v21 }
  0xe2   :  { %v366_v26 = vmul.f32 %v359_v23, %v40_v50 }
  0xe8   :  { %v363_v1 = vpop.permute.xlu0 %362 }
  0xe9   :  { %v365_v25 = vsel %vm358_vm5, %v360_v22, %v363_v1 }
  0xea   :  { %v367_v27 = vmul.f32 %v365_v25, %v42_v24 }
  0xec   :  { %v368_v28 = vadd.f32 %v367_v27, %v366_v26 }
  0xee   :  { %369 = vst [vmem:[#allocation7] sm:$0xff] %v368_v28 }
  0xef   :  { %380 = dma.vmem_to_hbm [thread:$0]  %s376_s19, 128, %s378_s22, [#allocation4]  }
  0xf0   :  { %481 = dma.done.wait [#allocation4], 128  }
  0xf1   :  { %482 = vsyncadd [#allocation4], 4294967168 }
  0xf2   :  { %385 = vsyncpa [#allocation3], 1 }
  0xf3   :  { %386 = vsyncpa [#allocation6], 1 }
  0xf4   :  { %387 = vsyncpa [#allocation4], 1 }

</bundles_post_ra>
